<compile_context>
chip_gen: v6e
topology: v6e:2x2x1
jax: 0.10.0
libtpu: 0.0.40
codegen_flags: <defaults>
</compile_context>

<pallas_src>
import functools

import numpy as np
import jax
import jax.numpy as jnp
from jax import lax
from jax.experimental import pallas as pl
from jax.experimental.pallas import tpu as pltpu

H2 = 16        # conv1 out channels
H1 = 32        # conv2 out channels
LANES = 128    # TPU lane width


def _round_up(x, m):
    return (x + m - 1) // m * m


def _actor_kernel(xp_ref, c_ref, out_ref, relay_ref, *, ft, sth2, num_assets):
    # xp_ref   : [1, FT, NB*128]  packed input, row = f*T + t, lane = (nb*G+g)*A + a
    # c_ref    : [R, C]           consolidated weights (see prepare_actor_params)
    # out_ref  : [1, NB, 128]     asset probabilities, lane-packed per batch elem
    # relay_ref: [NB, 128]        VMEM scratch for the logits relayout
    a = num_assets
    lb = xp_ref.shape[2]
    nb = lb // LANES
    r3 = sth2 + H1
    r_bd = _round_up(r3 + 1, 8)
    f32 = jnp.float32

    xp = xp_ref[0]                                           # [FT, LB]

    # conv1 (+ReLU): all ST output times in ONE matmul (taps + time shift baked in).
    w1 = c_ref[0:sth2, 0:ft]
    b1 = c_ref[0:sth2, ft:ft + 1].astype(f32)
    phi1 = jnp.maximum(
        jnp.dot(w1, xp, preferred_element_type=f32) + b1, 0.0)      # [STH2, LB]

    # conv2 (+ReLU): contracts (time, channel) in ONE matmul.
    w2 = c_ref[sth2:r3, 0:sth2]
    b2 = c_ref[sth2:r3, sth2:sth2 + 1].astype(f32)
    phi2 = jnp.maximum(
        jnp.dot(w2, phi1.astype(w2.dtype), preferred_element_type=f32) + b2,
        0.0)                                                         # [H1, LB]

    # conv3: phi2 channels via matmul; w0 (= x[:, 0, 0, :]) channel + bias fused.
    w3 = c_ref[r3:r3 + 1, 0:H1]
    w3_w0 = c_ref[r3:r3 + 1, H1:H1 + 1].astype(f32)
    b3 = c_ref[r3:r3 + 1, H1 + 1:H1 + 2].astype(f32)
    w0 = xp[0:1, :].astype(f32)
    pre = (jnp.dot(w3, phi2.astype(w3.dtype), preferred_element_type=f32)
           + w0 * w3_w0 + b3)                                        # [1, LB]

    # Relayout lane-packed logits [1, NB*128] -> dense [NB, 128] through VMEM so
    # the softmax epilogue runs at full sublane occupancy and the final store is
    # a dense unmasked 128-lane slab (guaranteed-lowering alternative to reshape).
    for k in range(nb):
        relay_ref[k:k + 1, :] = pre[:, k * LANES:(k + 1) * LANES]
    pre2 = relay_ref[...]                                            # [NB, 128]

    # Per-group max (A aligned lanes) via a masked XOR-butterfly of lane rotates.
    lane = lax.broadcasted_iota(jnp.int32, (nb, LANES), 1)
    m = pre2
    s = 1
    while s < a:                                  # log2(A) steps, A divides 128
        up = pltpu.roll(m, shift=LANES - s, axis=1)   # lane i <- m[i + s]
        dn = pltpu.roll(m, shift=s, axis=1)           # lane i <- m[i - s]
        m = jnp.maximum(m, jnp.where((lane & s) == 0, up, dn))
        s *= 2
    m = jnp.maximum(m, 0.0)                       # implicit cash logit (== 0)

    e = jnp.exp(pre2 - m)                                            # [NB, 128]
    # Group sums via one MXU matmul against the block-diagonal ones matrix.
    bd = c_ref[r_bd:r_bd + LANES, 0:LANES].astype(f32)
    denom = jnp.dot(e, bd, preferred_element_type=f32) + jnp.exp(-m)
    # NOTE: pl.reciprocal(denom, approx=True) would move the divide to the EUP,
    # but the approx error is near the test tolerance, so keep the exact divide.
    out_ref[0] = e / denom      # asset probs; cash = 1 - sum(assets) in wrapper


def prepare_actor_params(params, feature_dim, window_length, num_assets,
                         dtype=jnp.float32):
    """One-time packing of the conv weights into a single constant slab.

    Pass dtype=jnp.bfloat16 on v6e/v7x to halve xp HBM traffic (loosen the
    correctness tolerances accordingly).
    """
    W1, b1, W2, b2, W3, b3 = (np.asarray(p, np.float32) for p in params)
    F, T, A = feature_dim, window_length, num_assets
    assert T >= 4, "window_length must be >= 4"
    assert LANES % A == 0, "asset dim must divide 128"
    ST = T - 3
    FT = F * T
    STH2 = ST * H2
    r3 = STH2 + H1
    r_bd = _round_up(r3 + 1, 8)
    rows = r_bd + LANES
    cols = _round_up(max(FT + 1, STH2 + 1, H1 + 2, LANES), LANES)

    c = np.zeros((rows, cols), np.float32)
    # conv1: W1_big[t*H2 + o, f*T + (1 + t + k)] = W1[o, f, k, 0]; bias in col FT.
    for t in range(ST):
        for k in range(3):
            for f in range(F):
                c[t * H2:(t + 1) * H2, f * T + 1 + t + k] = W1[:, f, k, 0]
    c[0:STH2, FT] = np.tile(b1, ST)
    # conv2: W2_f[c, t*H2 + o] = W2[c, o, t, 0]; bias in col STH2.
    c[STH2:r3, 0:STH2] = np.transpose(W2[:, :, :, 0], (0, 2, 1)).reshape(H1, STH2)
    c[STH2:r3, STH2] = b2
    # conv3 row: [w3 over phi2 channels | w3 for the w0 channel | b3].
    c[r3, 0:H1] = W3[0, 0:H1, 0, 0]
    c[r3, H1] = W3[0, H1, 0, 0]
    c[r3, H1 + 1] = b3[0]
    # Block-diagonal ones (A x A groups within 128 lanes) for the group-sum matmul.
    j = np.arange(LANES)
    c[r_bd:r_bd + LANES, 0:LANES] = (j[:, None] // A == j[None, :] // A)
    return jnp.asarray(c, dtype)


@functools.partial(jax.jit, static_argnames=("block_groups",))
def actor_forward_pallas(x, const_slab, block_groups=64):
    """x: [B, F, T, A] float32 (NCHW, same layout as the PyTorch module)."""
    B, F, T, A = x.shape
    ST = T - 3
    FT = F * T
    STH2 = ST * H2
    assert LANES % A == 0, "asset dim must divide 128"
    assert const_slab.shape[0] == _round_up(STH2 + H1 + 1, 8) + LANES
    G = LANES // A                       # batch elements per 128-lane group
    BG = -(-B // G)                      # lane groups needed
    NB = max(1, min(block_groups, BG))   # lane groups per grid step (~1 MiB xp)
    NBLK = -(-BG // NB)
    B_pad = NBLK * NB * G
    LB = NB * LANES

    xw = x.astype(const_slab.dtype)
    if B_pad != B:
        xw = jnp.pad(xw, ((0, B_pad - B), (0, 0), (0, 0), (0, 0)))
    # Lane-pack: row = (f, t), lane = (nb, g, a).
    xp = (xw.reshape(NBLK, NB * G, FT, A)
            .transpose(0, 2, 1, 3)
            .reshape(NBLK, FT, LB))

    kernel = functools.partial(_actor_kernel, ft=FT, sth2=STH2, num_assets=A)
    out = pl.pallas_call(
        kernel,
        out_shape=jax.ShapeDtypeStruct((NBLK, NB, LANES), jnp.float32),
        grid=(NBLK,),
        in_specs=[
            pl.BlockSpec((1, FT, LB), lambda i: (i, 0, 0)),          # xp
            pl.BlockSpec(const_slab.shape, lambda i: (0, 0)),        # weights
        ],
        out_specs=pl.BlockSpec((1, NB, LANES), lambda i: (i, 0, 0)),
        scratch_shapes=[pltpu.VMEM((NB, LANES), jnp.float32)],
        compiler_params=pltpu.CompilerParams(
            dimension_semantics=("parallel",)),   # v7x: shards grid over 2 TCs
    )(xp, const_slab)

    assets = out.reshape(B_pad, A)[:B]                               # [B, A]
    cash = 1.0 - jnp.sum(assets, axis=-1, keepdims=True)             # [B, 1]
    return jnp.concatenate([cash, assets], axis=-1)                  # [B, A+1]


def actor_forward_reference(x, params):
    """Pure-JAX reference mirroring the PyTorch forward exactly."""
    W1, b1, W2, b2, W3, b3 = params
    B, F, T, A = x.shape
    ST = T - 3
    dn = ('NCHW', 'OIHW', 'NCHW')
    prec = lax.Precision.HIGHEST
    w0 = x[:, :1, :1, :]
    xi = x[:, :, 1:, :]
    phi1 = jax.nn.relu(
        lax.conv_general_dilated(xi, W1, (1, 1), 'VALID',
                                 dimension_numbers=dn, precision=prec)
        + b1[None, :, None, None])
    phi2 = jax.nn.relu(
        lax.conv_general_dilated(phi1, W2, (ST, 1), 'VALID',
                                 dimension_numbers=dn, precision=prec)
        + b2[None, :, None, None])
    h = jnp.concatenate([phi2, w0], axis=1)
    action = (lax.conv_general_dilated(h, W3, (1, 1), 'VALID',
                                       dimension_numbers=dn, precision=prec)
              + b3[None, :, None, None])
    cash = jnp.zeros(action.shape[:-1] + (1,), action.dtype)
    action = jnp.concatenate([cash, action], axis=-1)
    action = action.reshape(B, -1)
    return jax.nn.softmax(action, axis=1)


def init_params(key, F, T):
    ST = T - 3
    ks = jax.random.split(key, 6)
    W1 = 0.1 * jax.random.normal(ks[0], (H2, F, 3, 1), jnp.float32)
    b1 = 0.1 * jax.random.normal(ks[1], (H2,), jnp.float32)
    W2 = 0.1 * jax.random.normal(ks[2], (H1, H2, ST, 1), jnp.float32)
    b2 = 0.1 * jax.random.normal(ks[3], (H1,), jnp.float32)
    W3 = 0.1 * jax.random.normal(ks[4], (1, H1 + 1, 1, 1), jnp.float32)
    b3 = 0.1 * jax.random.normal(ks[5], (1,), jnp.float32)
    return (W1, b1, W2, b2, W3, b3)


if __name__ == "__main__":
    F, T, A = 4, 8, 16       # features, window_length, assets
    key = jax.random.PRNGKey(0)
    kx, kp, kx2 = jax.random.split(key, 3)
    params = init_params(kp, F, T)
    const_slab = prepare_actor_params(params, F, T, A)   # one-time weight packing

    # Small batch (single grid step).
    B = 12
    x = jax.random.normal(kx, (B, F, T, A), jnp.float32)
    out = jax.block_until_ready(actor_forward_pallas(x, const_slab))
    ref = jax.block_until_ready(actor_forward_reference(x, params))
    assert out.shape == (B, A + 1)
    assert jnp.allclose(out, ref, rtol=1e-4, atol=5e-5), (
        f"mismatch: max abs err {jnp.max(jnp.abs(out - ref))}")

    # Odd batch exercising multiple grid steps, batch padding and block packing.
    B2 = 37
    x2 = jax.random.normal(kx2, (B2, F, T, A), jnp.float32)
    out2 = jax.block_until_ready(
        actor_forward_pallas(x2, const_slab, block_groups=4))
    ref2 = jax.block_until_ready(actor_forward_reference(x2, params))
    assert out2.shape == (B2, A + 1)
    assert jnp.allclose(out2, ref2, rtol=1e-4, atol=5e-5), (
        f"mismatch: max abs err {jnp.max(jnp.abs(out2 - ref2))}")

    print("KERNEL_OK")
</pallas_src>

<mosaic_0001>
module attributes {stable_mosaic.version = 11 : i64} {
  func.func @_actor_kernel(%arg0: i32, %arg1: memref<1x32x256xf32, #tpu.memory_space<vmem>>, %arg2: memref<248x128xf32, #tpu.memory_space<vmem>>, %arg3: memref<1x2x128xf32, #tpu.memory_space<vmem>>, %arg4: memref<2x128xf32, #tpu.memory_space<vmem>>) attributes {dimension_semantics = [#tpu.dimension_semantics<parallel>], iteration_bounds = array<i64: 1>, scalar_prefetch = 0 : i64, scratch_operands = 1 : i64, tpu.core_type = #tpu.core_type<tc>, window_params = [{transform_indices = @transform_0, window_bounds = array<i64: 1, 32, 256>}, {pipeline_mode = #tpu.pipeline_mode<synchronous>, transform_indices = @transform_1, window_bounds = array<i64: 248, 128>}, {transform_indices = @transform_2, window_bounds = array<i64: 1, 2, 128>}]} {
    %c0 = arith.constant 0 : index
    %c0_0 = arith.constant 0 : index
    %c0_1 = arith.constant 0 : index
    %0 = vector.load %arg1[%c0, %c0_0, %c0_1] : memref<1x32x256xf32, #tpu.memory_space<vmem>>, vector<1x32x256xf32>
    %1 = vector.shape_cast %0 : vector<1x32x256xf32> to vector<32x256xf32>
    %c0_2 = arith.constant 0 : index
    %c0_3 = arith.constant 0 : index
    %2 = vector.load %arg2[%c0_2, %c0_3] : memref<248x128xf32, #tpu.memory_space<vmem>>, vector<80x32xf32>
    %c0_4 = arith.constant 0 : index
    %c32 = arith.constant 32 : index
    %3 = vector.load %arg2[%c0_4, %c32] : memref<248x128xf32, #tpu.memory_space<vmem>>, vector<80x1xf32>
    %cst = arith.constant dense<0.000000e+00> : vector<80x256xf32>
    %4 = tpu.matmul %2, %1, %cst {dimension_numbers = #tpu.dot_dimension_numbers<[1], [0], [0], [1], [0, 0, 1, 1], [], []>} : vector<80x32xf32>, vector<32x256xf32>, vector<80x256xf32> -> vector<80x256xf32>
    %5 = vector.broadcast %3 : vector<80x1xf32> to vector<80x256xf32>
    %6 = arith.addf %4, %5 : vector<80x256xf32>
    %cst_5 = arith.constant 0.000000e+00 : f32
    %7 = vector.broadcast %cst_5 : f32 to vector<80x256xf32>
    %8 = arith.maximumf %6, %7 : vector<80x256xf32>
    %c80 = arith.constant 80 : index
    %c0_6 = arith.constant 0 : index
    %9 = vector.load %arg2[%c80, %c0_6] : memref<248x128xf32, #tpu.memory_space<vmem>>, vector<32x80xf32>
    %c80_7 = arith.constant 80 : index
    %c80_8 = arith.constant 80 : index
    %10 = vector.load %arg2[%c80_7, %c80_8] : memref<248x128xf32, #tpu.memory_space<vmem>>, vector<32x1xf32>
    %cst_9 = arith.constant dense<0.000000e+00> : vector<32x256xf32>
    %11 = tpu.matmul %9, %8, %cst_9 {dimension_numbers = #tpu.dot_dimension_numbers<[1], [0], [0], [1], [0, 0, 1, 1], [], []>} : vector<32x80xf32>, vector<80x256xf32>, vector<32x256xf32> -> vector<32x256xf32>
    %12 = vector.broadcast %10 : vector<32x1xf32> to vector<32x256xf32>
    %13 = arith.addf %11, %12 : vector<32x256xf32>
    %cst_10 = arith.constant 0.000000e+00 : f32
    %14 = vector.broadcast %cst_10 : f32 to vector<32x256xf32>
    %15 = arith.maximumf %13, %14 : vector<32x256xf32>
    %c112 = arith.constant 112 : index
    %c0_11 = arith.constant 0 : index
    %16 = vector.load %arg2[%c112, %c0_11] : memref<248x128xf32, #tpu.memory_space<vmem>>, vector<1x32xf32>
    %c112_12 = arith.constant 112 : index
    %c32_13 = arith.constant 32 : index
    %17 = vector.load %arg2[%c112_12, %c32_13] : memref<248x128xf32, #tpu.memory_space<vmem>>, vector<1x1xf32>
    %c112_14 = arith.constant 112 : index
    %c33 = arith.constant 33 : index
    %18 = vector.load %arg2[%c112_14, %c33] : memref<248x128xf32, #tpu.memory_space<vmem>>, vector<1x1xf32>
    %19 = vector.extract_strided_slice %1 {offsets = [0, 0], sizes = [1, 256], strides = [1, 1]} : vector<32x256xf32> to vector<1x256xf32>
    %cst_15 = arith.constant dense<0.000000e+00> : vector<1x256xf32>
    %20 = tpu.matmul %16, %15, %cst_15 {dimension_numbers = #tpu.dot_dimension_numbers<[1], [0], [0], [1], [0, 0, 1, 1], [], []>} : vector<1x32xf32>, vector<32x256xf32>, vector<1x256xf32> -> vector<1x256xf32>
    %21 = vector.broadcast %17 : vector<1x1xf32> to vector<1x256xf32>
    %22 = arith.mulf %19, %21 : vector<1x256xf32>
    %23 = arith.addf %20, %22 : vector<1x256xf32>
    %24 = vector.broadcast %18 : vector<1x1xf32> to vector<1x256xf32>
    %25 = arith.addf %23, %24 : vector<1x256xf32>
    %26 = vector.extract_strided_slice %25 {offsets = [0, 0], sizes = [1, 128], strides = [1, 1]} : vector<1x256xf32> to vector<1x128xf32>
    %c0_16 = arith.constant 0 : index
    %c0_17 = arith.constant 0 : index
    %27 = vector.load %arg4[%c0_16, %c0_17] : memref<2x128xf32, #tpu.memory_space<vmem>>, vector<1x128xf32>
    tpu.vector_store %arg4[%c0_16, %c0_17], %26 {strides = array<i32>} : memref<2x128xf32, #tpu.memory_space<vmem>>, vector<1x128xf32>,
    %28 = vector.extract_strided_slice %25 {offsets = [0, 128], sizes = [1, 128], strides = [1, 1]} : vector<1x256xf32> to vector<1x128xf32>
    %c1 = arith.constant 1 : index
    %c0_18 = arith.constant 0 : index
    %29 = vector.load %arg4[%c1, %c0_18] : memref<2x128xf32, #tpu.memory_space<vmem>>, vector<1x128xf32>
    tpu.vector_store %arg4[%c1, %c0_18], %28 {strides = array<i32>} : memref<2x128xf32, #tpu.memory_space<vmem>>, vector<1x128xf32>,
    %c0_19 = arith.constant 0 : index
    %c0_20 = arith.constant 0 : index
    %30 = vector.load %arg4[%c0_19, %c0_20] : memref<2x128xf32, #tpu.memory_space<vmem>>, vector<2x128xf32>
    %31 = tpu.iota {dimensions = array<i32: 1>} : vector<2x128xi32>
    %c127_i32 = arith.constant 127 : i32
    %32 = tpu.dynamic_rotate %30 by %c127_i32 dim 1 : vector<2x128xf32>, i32 -> vector<2x128xf32>
    %c1_i32 = arith.constant 1 : i32
    %33 = tpu.dynamic_rotate %30 by %c1_i32 dim 1 : vector<2x128xf32>, i32 -> vector<2x128xf32>
    %c1_i32_21 = arith.constant 1 : i32
    %34 = vector.broadcast %c1_i32_21 : i32 to vector<2x128xi32>
    %35 = arith.andi %31, %34 : vector<2x128xi32>
    %c0_i32 = arith.constant 0 : i32
    %36 = vector.broadcast %c0_i32 : i32 to vector<2x128xi32>
    %37 = arith.cmpi eq, %35, %36 : vector<2x128xi32>
    %38 = arith.select %37, %32, %33 : vector<2x128xi1>, vector<2x128xf32>
    %39 = arith.maximumf %30, %38 : vector<2x128xf32>
    %c126_i32 = arith.constant 126 : i32
    %40 = tpu.dynamic_rotate %39 by %c126_i32 dim 1 : vector<2x128xf32>, i32 -> vector<2x128xf32>
    %c2_i32 = arith.constant 2 : i32
    %41 = tpu.dynamic_rotate %39 by %c2_i32 dim 1 : vector<2x128xf32>, i32 -> vector<2x128xf32>
    %c2_i32_22 = arith.constant 2 : i32
    %42 = vector.broadcast %c2_i32_22 : i32 to vector<2x128xi32>
    %43 = arith.andi %31, %42 : vector<2x128xi32>
    %c0_i32_23 = arith.constant 0 : i32
    %44 = vector.broadcast %c0_i32_23 : i32 to vector<2x128xi32>
    %45 = arith.cmpi eq, %43, %44 : vector<2x128xi32>
    %46 = arith.select %45, %40, %41 : vector<2x128xi1>, vector<2x128xf32>
    %47 = arith.maximumf %39, %46 : vector<2x128xf32>
    %c124_i32 = arith.constant 124 : i32
    %48 = tpu.dynamic_rotate %47 by %c124_i32 dim 1 : vector<2x128xf32>, i32 -> vector<2x128xf32>
    %c4_i32 = arith.constant 4 : i32
    %49 = tpu.dynamic_rotate %47 by %c4_i32 dim 1 : vector<2x128xf32>, i32 -> vector<2x128xf32>
    %c4_i32_24 = arith.constant 4 : i32
    %50 = vector.broadcast %c4_i32_24 : i32 to vector<2x128xi32>
    %51 = arith.andi %31, %50 : vector<2x128xi32>
    %c0_i32_25 = arith.constant 0 : i32
    %52 = vector.broadcast %c0_i32_25 : i32 to vector<2x128xi32>
    %53 = arith.cmpi eq, %51, %52 : vector<2x128xi32>
    %54 = arith.select %53, %48, %49 : vector<2x128xi1>, vector<2x128xf32>
    %55 = arith.maximumf %47, %54 : vector<2x128xf32>
    %c120_i32 = arith.constant 120 : i32
    %56 = tpu.dynamic_rotate %55 by %c120_i32 dim 1 : vector<2x128xf32>, i32 -> vector<2x128xf32>
    %c8_i32 = arith.constant 8 : i32
    %57 = tpu.dynamic_rotate %55 by %c8_i32 dim 1 : vector<2x128xf32>, i32 -> vector<2x128xf32>
    %c8_i32_26 = arith.constant 8 : i32
    %58 = vector.broadcast %c8_i32_26 : i32 to vector<2x128xi32>
    %59 = arith.andi %31, %58 : vector<2x128xi32>
    %c0_i32_27 = arith.constant 0 : i32
    %60 = vector.broadcast %c0_i32_27 : i32 to vector<2x128xi32>
    %61 = arith.cmpi eq, %59, %60 : vector<2x128xi32>
    %62 = arith.select %61, %56, %57 : vector<2x128xi1>, vector<2x128xf32>
    %63 = arith.maximumf %55, %62 : vector<2x128xf32>
    %cst_28 = arith.constant 0.000000e+00 : f32
    %64 = vector.broadcast %cst_28 : f32 to vector<2x128xf32>
    %65 = arith.maximumf %63, %64 : vector<2x128xf32>
    %66 = arith.subf %30, %65 : vector<2x128xf32>
    %67 = math.exp %66 : vector<2x128xf32>
    %c120 = arith.constant 120 : index
    %c0_29 = arith.constant 0 : index
    %68 = vector.load %arg2[%c120, %c0_29] : memref<248x128xf32, #tpu.memory_space<vmem>>, vector<128x128xf32>
    %cst_30 = arith.constant dense<0.000000e+00> : vector<2x128xf32>
    %69 = tpu.matmul %67, %68, %cst_30 {dimension_numbers = #tpu.dot_dimension_numbers<[1], [0], [0], [1], [0, 0, 1, 1], [], []>} : vector<2x128xf32>, vector<128x128xf32>, vector<2x128xf32> -> vector<2x128xf32>
    %cst_31 = arith.constant 0.000000e+00 : f32
    %70 = vector.broadcast %cst_31 : f32 to vector<2x128xf32>
    %71 = arith.subf %70, %65 : vector<2x128xf32>
    %72 = math.exp %71 : vector<2x128xf32>
    %73 = arith.addf %69, %72 : vector<2x128xf32>
    %74 = arith.divf %67, %73 : vector<2x128xf32>
    %c0_32 = arith.constant 0 : index
    %c0_33 = arith.constant 0 : index
    %c0_34 = arith.constant 0 : index
    %75 = vector.load %arg3[%c0_32, %c0_33, %c0_34] : memref<1x2x128xf32, #tpu.memory_space<vmem>>, vector<1x2x128xf32>
    %76 = vector.shape_cast %75 : vector<1x2x128xf32> to vector<2x128xf32>
    %77 = vector.shape_cast %74 : vector<2x128xf32> to vector<1x2x128xf32>
    tpu.vector_store %arg3[%c0_32, %c0_33, %c0_34], %77 {strides = array<i32>} : memref<1x2x128xf32, #tpu.memory_space<vmem>>, vector<1x2x128xf32>,
    return
  }
  func.func @transform_0(%arg0: i32) -> (i32, i32, i32) {
    %c0_i32 = arith.constant 0 : i32
    %c0_i32_0 = arith.constant 0 : i32
    %c0_i32_1 = arith.constant 0 : i32
    return %arg0, %c0_i32, %c0_i32_0 : i32, i32, i32
  }
  func.func @transform_1(%arg0: i32) -> (i32, i32) {
    %c0_i32 = arith.constant 0 : i32
    %c0_i32_0 = arith.constant 0 : i32
    %c0_i32_1 = arith.constant 0 : i32
    return %c0_i32, %c0_i32_0 : i32, i32
  }
  func.func @transform_2(%arg0: i32) -> (i32, i32, i32) {
    %c0_i32 = arith.constant 0 : i32
    %c0_i32_0 = arith.constant 0 : i32
    %c0_i32_1 = arith.constant 0 : i32
    return %arg0, %c0_i32, %c0_i32_0 : i32, i32, i32
  }
}

</mosaic_0001>

<bundles_post_ra>
// kernel: actor_forward_pallas.1
= control target key start
LH: loop header
LB: loop body
LE: loop exit
PB: predicated region body
PF: predicated region fallthrough
CT: control target
= control target key end

     0   :  { %v699_v3 = vmov 0.0   ;;  %vm79_vm0 = vcmask 261120   ;;  %v700_v14 = vmov 32   ;;  %v701_v22 = vmov 80   ;;  %s703_s26 = smov 127   ;;  %s704_s27 = smov 1   ;;  %s937_s0 = inlined_call_operand.vmem [shape: f32[1,32,256], index: 0, kind: input, shape index: {}]   ;;  %s938_s1 = inlined_call_operand.vmem [shape: f32[248,128], index: 1, kind: input, shape index: {}]   ;;  %s939_s2 = inlined_call_operand.vmem [shape: f32[1,2,128], index: 2, kind: output, shape index: {}]  }
   0x1   :  { %v18_v0 = vld [vmem:[%s937_s0 + $0x38] sm:$0xff]  ;;  %v17_v1 = vld [vmem:[%s937_s0 + $0x30] sm:$0xff]  ;;  %v16_v2 = vld [vmem:[%s937_s0 + $0x28] sm:$0xff]  ;;  %164 = vmatprep.mubr.f32.mxu0 %v699_v3  ;;  %212 = vmatprep.mubr.f32.mxu1 %v699_v3  ;;  %vm269_vm1 = vcmask 654336   ;;  %s705_s28 = smov 2   ;;  %s707_s9 = smov 4  }
   0x2   :  { %124 = vmatprep.subr.mxu0 %v18_v0  ;;  %v15_v4 = vld [vmem:[%s937_s0 + $0x20] sm:$0xff]  ;;  %666 = vmatprep.subr.mxu1 %v18_v0  ;;  %v14_v5 = vld [vmem:[%s937_s0 + $0x18] sm:$0xff]  ;;  %v13_v6 = vld [vmem:[%s937_s0 + $0x10] sm:$0xff]  ;;  %s708_s10 = smov 124   ;;  %vm709_vm5 = vmmov 0   ;;  %s710_s25 = smov 8  }
   0x3   :  { %125 = vmatpush1.msra.mxu0 %v17_v1  ;;  %670 = vmatpush1.msra.mxu1 %v17_v1  ;;  %v750_v7 = vld [vmem:[%s937_s0 + $0x8] sm:$0xff]  ;;  %v755_v8 = vld [vmem:[%s937_s0] sm:$0xff]  ;;  %v26_v13 = vld [vmem:[%s938_s1 + $0x38] sm:$0xff]  ;;  %s706_s0 = smov 126  }
   0x4   :  { %126 = vmatprep.subr.mxu0 %v16_v2  ;;  %667 = vmatprep.subr.mxu1 %v16_v2  ;;  %v19_v9 = vld [vmem:[%s938_s1] sm:$0xff]  ;;  %v20_v11 = vld [vmem:[%s938_s1 + $0x8] sm:$0xff]  ;;  %v21_v15 = vld [vmem:[%s938_s1 + $0x10] sm:$0xff] }
   0x5   :  { %127 = vmatpush1.msra.mxu0 %v15_v4  ;;  %671 = vmatpush1.msra.mxu1 %v15_v4  ;;  %v27_v10 = vld [vmem:[%s938_s1 + $0x40] sm:$0xff]  ;;  %v28_v12 = vld [vmem:[%s938_s1 + $0x48] sm:$0xff]  ;;  %v25_v16 = vld [vmem:[%s938_s1 + $0x30] sm:$0xff] }
   0x6   :  { %128 = vmatprep.subr.mxu0 %v14_v5  ;;  %668 = vmatprep.subr.mxu1 %v14_v5  ;;  %v22_v17 = vld [vmem:[%s938_s1 + $0x18] sm:$0xff]  ;;  %v23_v18 = vld [vmem:[%s938_s1 + $0x20] sm:$0xff]  ;;  %v24_v19 = vld [vmem:[%s938_s1 + $0x28] sm:$0xff] }
   0x7   :  { %129 = vmatpush1.msra.mxu0 %v13_v6  ;;  %672 = vmatpush1.msra.mxu1 %v13_v6  ;;  %v814_v20 = vld [vmem:[%s938_s1 + $0x60] sm:$0xff]  ;;  %v819_v21 = vld [vmem:[%s938_s1 + $0x68] sm:$0xff]  ;;  %v826_v23 = vld [vmem:[%s938_s1 + $0x50] sm:$0xff] }
   0x8   :  { %130 = vmatprep.subr.mxu0 %v750_v7  ;;  %669 = vmatprep.subr.mxu1 %v750_v7  ;;  %v831_v24 = vld [vmem:[%s938_s1 + $0x58] sm:$0xff] }
   0x9   :  { %131 = vmatpush1.msra.mxu0 %v755_v8  ;;  %673 = vmatpush1.msra.mxu1 %v755_v8 }
   0xa   :  { %599 = vmatmul.mubr.msk.f32.vlgmr.msra.gmra.mxu0 %vm79_vm0, %v19_v9  ;;  %607 = vmatmul.mubr.msk.f32.vlgmr.msra.gmra.mxu1 %vm79_vm0, %v27_v10 }
   0xb   :  { %170 = vmatprep.mubr.f32.mxu0 %v699_v3  ;;  %218 = vmatprep.mubr.f32.mxu1 %v699_v3 }
   0xc   :  { %688 = vset.pattern.permute.xlu1 %v700_v14  ;;  %687 = vset.pattern.permute.xlu0 %v700_v14 }
   0xd   :  { %66 = vperm.xlu1 %688, %v26_v13   ;;  %76 = vperm.xlu0 %687, %v28_v12  }
   0xe   :  { %600 = vmatmul.mubr.msk.f32.gmra.mxu0 %vm79_vm0, %v20_v11  ;;  %608 = vmatmul.mubr.msk.f32.gmra.mxu1 %vm79_vm0, %v28_v12 }
   0xf   :  { %176 = vmatprep.mubr.f32.mxu0 %v699_v3  ;;  %342 = vmatprep.mubr.f32.mxu1 %v699_v3 }
  0x10   :  { %631 = vmatprep.subr.mxu0 %v699_v3 }
  0x11   :  { %61 = vperm.xlu1 %688, %v25_v16   ;;  %71 = vperm.xlu0 %687, %v27_v10  }
  0x12   :  { %601 = vmatmul.mubr.msk.f32.gmra.mxu0 %vm79_vm0, %v21_v15 }
  0x13   :  { %182 = vmatprep.mubr.f32.mxu0 %v699_v3 }
  0x15   :  { %51 = vperm.xlu1 %688, %v23_v18   ;;  %56 = vperm.xlu0 %687, %v24_v19  }
  0x16   :  { %602 = vmatmul.mubr.msk.f32.gmra.mxu0 %vm79_vm0, %v22_v17 }
  0x17   :  { %188 = vmatprep.mubr.f32.mxu0 %v699_v3 }
  0x19   :  { %41 = vperm.xlu1 %688, %v21_v15   ;;  %46 = vperm.xlu0 %687, %v22_v17  }
  0x1a   :  { %603 = vmatmul.mubr.msk.f32.gmra.mxu0 %vm79_vm0, %v23_v18 }
  0x1b   :  { %194 = vmatprep.mubr.f32.mxu0 %v699_v3 }
  0x1d   :  { %31 = vperm.xlu1 %688, %v19_v9   ;;  %36 = vperm.xlu0 %687, %v20_v11  }
  0x1e   :  { %604 = vmatmul.mubr.msk.f32.gmra.mxu0 %vm79_vm0, %v24_v19 }
  0x1f   :  { %200 = vmatprep.mubr.f32.mxu0 %v699_v3 }
  0x21   :  { %689 = vset.pattern.permute.xlu0 %v701_v22  ;;  %690 = vset.pattern.permute.xlu1 %v701_v22 }
  0x22   :  { %605 = vmatmul.mubr.msk.f32.gmra.mxu0 %vm79_vm0, %v25_v16  ;;  %266 = vperm.xlu0 %689, %v819_v21  }
  0x23   :  { %206 = vmatprep.mubr.f32.mxu0 %v699_v3  ;;  %261 = vperm.xlu1 %690, %v814_v20  }
  0x26   :  { %606 = vmatmul.mubr.msk.f32.gmra.mxu0 %vm79_vm0, %v26_v13  ;;  %251 = vperm.xlu0 %689, %v826_v23  }
  0x27   :  { %256 = vperm.xlu1 %690, %v831_v24   ;;  %663 = vmatprep.mubr.msk.f32.mxu0 %vm709_vm5, %v699_v3 }
  0x2b   :  { %691 = vset.pattern.permute.xlu1 %v700_v14 }
  0x88   :  { %v77_v25 = vpop.permute.xlu0 %76  ;;  %v67_v48 = vpop.permute.xlu1 %66 }
  0x8c   :  { %v72_v30 = vpop.permute.xlu0 %71  ;;  %v62_v52 = vpop.permute.xlu1 %61 }
  0x90   :  { %v57_v55 = vpop.permute.xlu0 %56  ;;  %v52_v57 = vpop.permute.xlu1 %51 }
  0x94   :  { %v47_v63 = vpop.permute.xlu0 %46  ;;  %v42_v5 = vpop.permute.xlu1 %41 }
  0x98   :  { %v37_v16 = vpop.permute.xlu0 %36 }
  0xca   :  { %v835_v26 = vpop.f32.mrf.mxu0  ;;  %v214_v27 = vpop.f32.mrf.mxu1 }
  0xcb   :  { %v215_v36 = vadd.f32 %v214_v27, %v72_v30 }
  0xcc   :  { %v837_v28 = vpop.f32.mrf.mxu0  ;;  %v216_v29 = vpop.f32.mrf.mxu1 }
  0xcd   :  { %v217_v33 = vadd.f32 %v216_v29, %v72_v30  ;;  %v241_v44 = vmax.f32 %v215_v36, 0.0 }
  0xce   :  { %v839_v31 = vpop.f32.mrf.mxu0  ;;  %v220_v32 = vpop.f32.mrf.mxu1 }
  0xcf   :  { %v221_v34 = vadd.f32 %v220_v32, %v77_v25  ;;  %v242_v41 = vmax.f32 %v217_v33, 0.0  ;;  %v173_v30 = vadd.f32 %v839_v31, %v37_v16 }
  0xd0   :  { %v174_v35 = vpop.f32.mrf.mxu0  ;;  %v222_v37 = vpop.f32.mrf.mxu1 }
  0xd1   :  { %v223_v38 = vadd.f32 %v222_v37, %v77_v25  ;;  %v243_v40 = vmax.f32 %v221_v34, 0.0  ;;  %v32_v25 = vpop.permute.xlu1 %31  ;;  %v175_v27 = vadd.f32 %v174_v35, %v37_v16 }
  0xd2   :  { %v178_v39 = vpop.f32.mrf.mxu0  ;;  %v169_v33 = vadd.f32 %v837_v28, %v32_v25  ;;  %v167_v36 = vadd.f32 %v835_v26, %v32_v25  ;;  %v375_v26 = vld [vmem:[%s938_s1 + $0x70] sm:$0x1]  ;;  %v517_v25 = vld [vmem:[%s938_s1 + $0xe8] sm:$0xff] }
  0xd3   :  { %v244_v42 = vmax.f32 %v223_v38, 0.0  ;;  %v179_v19 = vadd.f32 %v178_v39, %v42_v5  ;;  %v228_v38 = vmax.f32 %v175_v27, 0.0  ;;  %v227_v39 = vmax.f32 %v173_v30, 0.0  ;;  %378 = vperm.xlu1 %691, %v375_v26   ;;  %v516_v27 = vld [vmem:[%s938_s1 + $0xe0] sm:$0xff] }
  0xd4   :  { %v180_v43 = vpop.f32.mrf.mxu0  ;;  %v225_v35 = vmax.f32 %v167_v36, 0.0  ;;  %v514_v36 = vld [vmem:[%s938_s1 + $0xd0] sm:$0xff] }
  0xd5   :  { %290 = vmatprep.subr.mxu1 %v244_v42  ;;  %v181_v17 = vadd.f32 %v180_v43, %v42_v5  ;;  %v229_v37 = vmax.f32 %v179_v19, 0.0 }
  0xd6   :  { %v184_v45 = vpop.f32.mrf.mxu0  ;;  %291 = vmatpush1.msra.mxu1 %v243_v40  ;;  %v226_v40 = vmax.f32 %v169_v33, 0.0 }
  0xd7   :  { %292 = vmatprep.subr.mxu1 %v242_v41  ;;  %v185_v14 = vadd.f32 %v184_v45, %v47_v63  ;;  %v230_v34 = vmax.f32 %v181_v17, 0.0 }
  0xd8   :  { %v186_v46 = vpop.f32.mrf.mxu0  ;;  %293 = vmatpush1.msra.mxu1 %v241_v44  ;;  %v267_v44 = vpop.permute.xlu0 %266 }
  0xd9   :  { %v187_v12 = vadd.f32 %v186_v46, %v47_v63  ;;  %v231_v32 = vmax.f32 %v185_v14, 0.0 }
  0xda   :  { %v190_v47 = vpop.f32.mrf.mxu0 }
  0xdb   :  { %v191_v10 = vadd.f32 %v190_v47, %v52_v57  ;;  %v232_v29 = vmax.f32 %v187_v12, 0.0 }
  0xdc   :  { %v192_v49 = vpop.f32.mrf.mxu0 }
  0xdd   :  { %v193_v6 = vadd.f32 %v192_v49, %v52_v57  ;;  %v233_v22 = vmax.f32 %v191_v10, 0.0 }
  0xde   :  { %v196_v50 = vpop.f32.mrf.mxu0 }
  0xdf   :  { %v197_v2 = vadd.f32 %v196_v50, %v57_v55  ;;  %v234_v18 = vmax.f32 %v193_v6, 0.0 }
  0xe0   :  { %v198_v51 = vpop.f32.mrf.mxu0 }
  0xe1   :  { %v199_v0 = vadd.f32 %v198_v51, %v57_v55  ;;  %v235_v15 = vmax.f32 %v197_v2, 0.0  ;;  %v252_v51 = vpop.permute.xlu0 %251 }
  0xe2   :  { %v202_v53 = vpop.f32.mrf.mxu0 }
  0xe3   :  { %v203_v62 = vadd.f32 %v202_v53, %v62_v52  ;;  %v236_v13 = vmax.f32 %v199_v0, 0.0 }
  0xe4   :  { %v204_v54 = vpop.f32.mrf.mxu0 }
  0xe5   :  { %v205_v60 = vadd.f32 %v204_v54, %v62_v52  ;;  %v237_v11 = vmax.f32 %v203_v62, 0.0 }
  0xe6   :  { %v208_v56 = vpop.f32.mrf.mxu0 }
  0xe7   :  { %v209_v58 = vadd.f32 %v208_v56, %v67_v48  ;;  %v238_v9 = vmax.f32 %v205_v60, 0.0 }
  0xe8   :  { %v210_v59 = vpop.f32.mrf.mxu0 }
  0xe9   :  { %v211_v61 = vadd.f32 %v210_v59, %v67_v48  ;;  %v239_v4 = vmax.f32 %v209_v58, 0.0 }
  0xeb   :  { %v240_v1 = vmax.f32 %v211_v61, 0.0 }
  0xed   :  { %294 = vmatprep.subr.mxu1 %v240_v1 }
  0xee   :  { %295 = vmatpush1.msra.mxu1 %v239_v4 }
  0xef   :  { %296 = vmatprep.subr.mxu1 %v238_v9 }
  0xf0   :  { %297 = vmatpush1.msra.mxu1 %v237_v11 }
  0xf1   :  { %298 = vmatprep.subr.mxu1 %v236_v13 }
  0xf2   :  { %299 = vmatpush1.msra.mxu1 %v235_v15 }
  0xf3   :  { %300 = vmatprep.subr.mxu1 %v234_v18 }
  0xf4   :  { %301 = vmatpush1.msra.mxu1 %v233_v22  ;;  %v518_v22 = vld [vmem:[%s938_s1 + $0xf0] sm:$0xff] }
  0xf5   :  { %302 = vmatprep.subr.mxu1 %v232_v29  ;;  %632 = vmatpush3.msra.mxu0 %v518_v22  ;;  %v515_v29 = vld [vmem:[%s938_s1 + $0xd8] sm:$0xff] }
  0xf6   :  { %303 = vmatpush1.msra.mxu1 %v231_v32  ;;  %633 = vmatprep.subr.mxu0 %v699_v3 }
  0xf7   :  { %304 = vmatprep.subr.mxu1 %v230_v34  ;;  %634 = vmatpush3.msra.mxu0 %v517_v25 }
  0xf8   :  { %305 = vmatpush1.msra.mxu1 %v229_v37  ;;  %635 = vmatprep.subr.mxu0 %v699_v3  ;;  %v513_v37 = vld [vmem:[%s938_s1 + $0xc8] sm:$0xff] }
  0xf9   :  { %306 = vmatprep.subr.mxu1 %v228_v38  ;;  %636 = vmatpush3.msra.mxu0 %v516_v27 }
  0xfa   :  { %307 = vmatpush1.msra.mxu1 %v227_v39  ;;  %637 = vmatprep.subr.mxu0 %v699_v3  ;;  %v512_v39 = vld [vmem:[%s938_s1 + $0xc0] sm:$0xff] }
  0xfb   :  { %308 = vmatprep.subr.mxu1 %v226_v40  ;;  %638 = vmatpush3.msra.mxu0 %v515_v29  ;;  %v511_v40 = vld [vmem:[%s938_s1 + $0xb8] sm:$0xff] }
  0xfc   :  { %309 = vmatpush1.msra.mxu1 %v225_v35  ;;  %639 = vmatprep.subr.mxu0 %v699_v3  ;;  %v510_v35 = vld [vmem:[%s938_s1 + $0xb0] sm:$0xff] }
  0xfd   :  { %609 = vmatmul.mubr.msk.f32.vlgmr.msra.gmra.mxu1 %vm269_vm1, %v826_v23  ;;  %v702_v23 = vmov 33   ;;  %640 = vmatpush3.msra.mxu0 %v514_v36 }
  0xfe   :  { %348 = vmatprep.mubr.f32.mxu1 %v699_v3  ;;  %692 = vset.pattern.permute.xlu0 %v702_v23 }
  0xff   :  { %457 = vperm.xlu0 %692, %v375_v26   ;;  %641 = vmatprep.subr.mxu0 %v699_v3 }
 0x100   :  { %642 = vmatpush3.msra.mxu0 %v513_v37 }
 0x101   :  { %610 = vmatmul.mubr.msk.f32.gmra.mxu1 %vm269_vm1, %v831_v24  ;;  %643 = vmatprep.subr.mxu0 %v699_v3 }
 0x102   :  { %354 = vmatprep.mubr.f32.mxu1 %v699_v3  ;;  %644 = vmatpush3.msra.mxu0 %v512_v39 }
 0x103   :  { %645 = vmatprep.subr.mxu0 %v699_v3 }
 0x104   :  { %646 = vmatpush3.msra.mxu0 %v511_v40 }
 0x105   :  { %611 = vmatmul.mubr.msk.f32.gmra.mxu1 %vm269_vm1, %v814_v20  ;;  %v262_v20 = vpop.permute.xlu1 %261  ;;  %647 = vmatprep.subr.mxu0 %v699_v3 }
 0x106   :  { %360 = vmatprep.mubr.f32.mxu1 %v699_v3  ;;  %648 = vmatpush3.msra.mxu0 %v510_v35 }
 0x107   :  { %649 = vmatprep.subr.mxu0 %v699_v3 }
 0x109   :  { %612 = vmatmul.mubr.msk.f32.gmra.mxu1 %vm269_vm1, %v819_v21  ;;  %v257_v47 = vpop.permute.xlu1 %256 }
 0x10a   :  { %449 = vmatprep.mubr.f32.mxu1 %v699_v3 }
 0x14e   :  { %v379_v0 = vpop.permute.xlu1 %378 }
 0x14f   :  { %v381_v1 = vmul.f32 %v379_v0, %v755_v8  ;;  %v382_v2 = vmul.f32 %v379_v0, %v750_v7  ;;  %v465_v8 = vlaneseq }
 0x151   :  { %v862_v14 = vand.u32 127, %v465_v8 }
 0x153   :  { %v471_v7 = vand.u32 1, %v862_v14  ;;  %v479_v19 = vand.u32 2, %v862_v14  ;;  %v487_v38 = vand.u32 4, %v862_v14 }
 0x155   :  { %vm472_vm2 = vcmp.eq.s32.totalorder %v471_v7, 0  ;;  %vm480_vm3 = vcmp.eq.s32.totalorder %v479_v19, 0  ;;  %vm488_vm4 = vcmp.eq.s32.totalorder %v487_v38, 0 }
 0x17a   :  { %v458_v5 = vpop.permute.xlu0 %457 }
 0x1bd   :  { %v344_v28 = vpop.f32.mrf.mxu1 }
 0x1be   :  { %v345_v58 = vadd.f32 %v344_v28, %v252_v51 }
 0x1bf   :  { %v346_v24 = vpop.f32.mrf.mxu1 }
 0x1c0   :  { %v347_v56 = vadd.f32 %v346_v24, %v252_v51  ;;  %v367_v63 = vmax.f32 %v345_v58, 0.0  ;;  %v509_v24 = vld [vmem:[%s938_s1 + $0xa8] sm:$0xff] }
 0x1c1   :  { %v350_v31 = vpop.f32.mrf.mxu1  ;;  %650 = vmatpush3.msra.mxu0 %v509_v24 }
 0x1c2   :  { %v351_v54 = vadd.f32 %v350_v31, %v257_v47  ;;  %v368_v62 = vmax.f32 %v347_v56, 0.0  ;;  %651 = vmatprep.subr.mxu0 %v699_v3 }
 0x1c3   :  { %v352_v41 = vpop.f32.mrf.mxu1 }
 0x1c4   :  { %v353_v52 = vadd.f32 %v352_v41, %v257_v47  ;;  %v369_v61 = vmax.f32 %v351_v54, 0.0  ;;  %v508_v41 = vld [vmem:[%s938_s1 + $0xa0] sm:$0xff] }
 0x1c5   :  { %v356_v42 = vpop.f32.mrf.mxu1  ;;  %652 = vmatpush3.msra.mxu0 %v508_v41 }
 0x1c6   :  { %v357_v50 = vadd.f32 %v356_v42, %v262_v20  ;;  %v370_v60 = vmax.f32 %v353_v52, 0.0  ;;  %v507_v42 = vld [vmem:[%s938_s1 + $0x98] sm:$0xff]  ;;  %653 = vmatprep.subr.mxu0 %v699_v3 }
 0x1c7   :  { %v358_v43 = vpop.f32.mrf.mxu1  ;;  %654 = vmatpush3.msra.mxu0 %v507_v42 }
 0x1c8   :  { %v359_v48 = vadd.f32 %v358_v43, %v262_v20  ;;  %v371_v59 = vmax.f32 %v357_v50, 0.0  ;;  %v506_v20 = vld [vmem:[%s938_s1 + $0x90] sm:$0xff]  ;;  %655 = vmatprep.subr.mxu0 %v699_v3  ;;  %v505_v43 = vld [vmem:[%s938_s1 + $0x88] sm:$0xff] }
 0x1c9   :  { %v362_v45 = vpop.f32.mrf.mxu1  ;;  %656 = vmatpush3.msra.mxu0 %v506_v20 }
 0x1ca   :  { %v363_v21 = vadd.f32 %v362_v45, %v267_v44  ;;  %v372_v57 = vmax.f32 %v359_v48, 0.0  ;;  %657 = vmatprep.subr.mxu0 %v699_v3  ;;  %v503_v45 = vld [vmem:[%s938_s1 + $0x78] sm:$0xff] }
 0x1cb   :  { %v364_v46 = vpop.f32.mrf.mxu1  ;;  %658 = vmatpush3.msra.mxu0 %v505_v43 }
 0x1cc   :  { %v365_v49 = vadd.f32 %v364_v46, %v267_v44  ;;  %v373_v55 = vmax.f32 %v363_v21, 0.0  ;;  %v504_v44 = vld [vmem:[%s938_s1 + $0x80] sm:$0xff]  ;;  %659 = vmatprep.subr.mxu0 %v699_v3  ;;  %v495_v21 = vand.u32 8, %v862_v14 }
 0x1cd   :  { %660 = vmatpush3.msra.mxu0 %v504_v44 }
 0x1ce   :  { %v374_v53 = vmax.f32 %v365_v49, 0.0  ;;  %661 = vmatprep.subr.mxu0 %v699_v3  ;;  %vm496_vm6 = vcmp.eq.s32.totalorder %v495_v21, 0 }
 0x1cf   :  { %662 = vmatpush3.msra.mxu0 %v503_v45 }
 0x1d0   :  { %409 = vmatprep.subr.mxu1 %v374_v53 }
 0x1d1   :  { %410 = vmatpush1.msra.mxu1 %v373_v55 }
 0x1d2   :  { %411 = vmatprep.subr.mxu1 %v372_v57 }
 0x1d3   :  { %412 = vmatpush1.msra.mxu1 %v371_v59 }
 0x1d4   :  { %413 = vmatprep.subr.mxu1 %v370_v60 }
 0x1d5   :  { %414 = vmatpush1.msra.mxu1 %v369_v61 }
 0x1d6   :  { %415 = vmatprep.subr.mxu1 %v368_v62 }
 0x1d7   :  { %416 = vmatpush1.msra.mxu1 %v367_v63 }
 0x1d8   :  { %613 = vmatmul.mubr.msk.f32.vlgmr.msra.gmra.mxu1 %vm79_vm0, %v375_v26 }
 0x298   :  { %v451_v4 = vpop.f32.mrf.mxu1 }
 0x299   :  { %v452_v6 = vadd.f32 %v451_v4, %v381_v1 }
 0x29a   :  { %v453_v9 = vpop.f32.mrf.mxu1 }
 0x29b   :  { %v454_v10 = vadd.f32 %v453_v9, %v382_v2  ;;  %v460_v11 = vadd.f32 %v458_v5, %v452_v6 }
 0x29d   :  { %v461_v12 = vadd.f32 %v458_v5, %v454_v10  ;;  %462 = vst [vmem:[#allocation2] sm:$0x1] %v460_v11 }
 0x29f   :  { %463 = vst [vmem:[#allocation2 + $0x1] sm:$0x1] %v461_v12 }
 0x2a6   :  { %v858_v13 = vld [vmem:[#allocation2] sm:$0x3] }
 0x2a7   :  { %467 = vrot.lane.b32.xlu1 %v858_v13, %s703_s26  ;;  %s711_s26 = smov 120  }
 0x2ab   :  { %469 = vrot.lane.b32.xlu1 %v858_v13, %s704_s27 }
 0x319   :  { %v468_v15 = vpop.permute.xlu1 %467 }
 0x31d   :  { %v470_v16 = vpop.permute.xlu1 %469 }
 0x31e   :  { %v473_v17 = vsel %vm472_vm2, %v468_v15, %v470_v16 }
 0x31f   :  { %v474_v18 = vmax.f32 %v858_v13, %v473_v17 }
 0x321   :  { %477 = vrot.lane.b32.xlu1 %v474_v18, %s705_s28  ;;  %475 = vrot.lane.b32.xlu0 %v474_v18, %s706_s0 }
 0x393   :  { %v478_v30 = vpop.permute.xlu1 %477  ;;  %v476_v32 = vpop.permute.xlu0 %475 }
 0x394   :  { %v481_v33 = vsel %vm480_vm3, %v476_v32, %v478_v30 }
 0x395   :  { %v482_v34 = vmax.f32 %v474_v18, %v481_v33 }
 0x397   :  { %485 = vrot.lane.b32.xlu1 %v482_v34, %s707_s9  ;;  %483 = vrot.lane.b32.xlu0 %v482_v34, %s708_s10 }
 0x409   :  { %v486_v26 = vpop.permute.xlu1 %485  ;;  %v484_v23 = vpop.permute.xlu0 %483 }
 0x40a   :  { %v489_v28 = vsel %vm488_vm4, %v484_v23, %v486_v26 }
 0x40b   :  { %v490_v31 = vmax.f32 %v482_v34, %v489_v28 }
 0x40d   :  { %493 = vrot.lane.b32.xlu1 %v490_v31, %s710_s25  ;;  %491 = vrot.lane.b32.xlu0 %v490_v31, %s711_s26 }
 0x47f   :  { %v494_v46 = vpop.permute.xlu1 %493  ;;  %v492_v47 = vpop.permute.xlu0 %491 }
 0x480   :  { %v497_v48 = vsel %vm496_vm6, %v492_v47, %v494_v46 }
 0x481   :  { %v498_v49 = vmax.f32 %v490_v31, %v497_v48 }
 0x483   :  { %v499_v50 = vmax.f32 %v498_v49, 0.0 }
 0x485   :  { %v500_v51 = vsub.f32 %v858_v13, %v499_v50  ;;  %v519_v54 = vsub.f32 0.0, %v499_v50 }
 0x487   :  { %v501_v52 = vmul.f32 1.442695, %v500_v51  ;;  %v520_v55 = vmul.f32 1.442695, %v519_v54 }
 0x489   :  { %693 = vpow2.f32 %v501_v52 }
 0x48a   :  { %695 = vpow2.f32 %v520_v55 }
 0x496   :  { %v694_v53 = vpop.eup %693 }
 0x497   :  { %664 = vmatmul.mubr.f32.vlgmr.msra.gmra.mxu0 %v694_v53  ;;  %v696_v56 = vpop.eup %695 }
 0x557   :  { %v588_v3 = vpop.f32.mrf.mxu0 }
 0x558   :  { %v589_v57 = vadd.f32 %v696_v56, %v588_v3 }
 0x559   :  { %v665_v58 = vpop.f32.mrf.mxu0 }
 0x55a   :  { %697 = vrcp.f32 %v589_v57 }
 0x567   :  { %v698_v59 = vpop.eup %697 }
 0x568   :  { %v593_v60 = vmul.f32 %v698_v59, %v694_v53 }
 0x56a   :  { %594 = vst [vmem:[%s939_s2] sm:$0x3] %v593_v60 }

</bundles_post_ra>
